<compile_context>
chip_gen: v5e
topology: v5e:2x2
jax: 0.10.0
libtpu: 0.0.40
codegen_flags: <defaults>
</compile_context>

<pallas_src>
import jax
import jax.numpy as jnp
from jax.experimental import pallas as pl
from jax.experimental.pallas import tpu as pltpu

_LANE = 128
_SUBLANE = 8


def _ceil_to(x, m):
    return -(-x // m) * m


def _pad_to(a, shape):
    return jnp.pad(a, [(0, t - s) for s, t in zip(a.shape, shape)])


def mlp_kernel(x_ref, w1_ref, b1_ref, w2_ref, b2_ref, w3_ref, b3_ref, o_ref):
    # x arrives as f32 (no separate wrapper pad/cast pass); cast to bf16 here,
    # immediately before the MXU.  All matmuls accumulate in f32.
    x = x_ref[...].astype(w1_ref.dtype)
    h = jnp.dot(x, w1_ref[...], preferred_element_type=jnp.float32)      # (tb, h1p)
    h = jnp.maximum(h + b1_ref[...], 0.0).astype(w2_ref.dtype)
    h = jnp.dot(h, w2_ref[...], preferred_element_type=jnp.float32)      # (tb, h2p)
    h = jnp.maximum(h + b2_ref[...], 0.0)
    # Final layer computed transposed so batch lands on the 128-lane axis:
    # (out_dim, tb) stores are lane-dense (unmasked vst) instead of masked
    # single-lane stores.  The f32 transpose uses the idle XLU.
    h_t = h.T.astype(w3_ref.dtype)                                       # (h2p, tb)
    y = jnp.dot(w3_ref[...], h_t, preferred_element_type=jnp.float32)    # (out_dim, tb)
    o_ref[...] = (y + b3_ref[...]).astype(o_ref.dtype)


def net_forward(x, params, *, block_batch=2048):
    """Fused 3-layer MLP forward.

    x: (batch, input_dim) float32.
    params: dict with w{k}: (in, out) float32, b{k}: (1, out) float32.
    Returns (batch, output_dim) float32.
    """
    w1, b1 = params["w1"], params["b1"]
    w2, b2 = params["w2"], params["b2"]
    w3, b3 = params["w3"], params["b3"]

    batch, in_dim = x.shape
    h1, h2, out_dim = w1.shape[1], w2.shape[1], w3.shape[1]
    h1p, h2p = _ceil_to(h1, _SUBLANE), _ceil_to(h2, _SUBLANE)
    cd = jnp.bfloat16

    # Tiny resident params: pad hidden 30 -> 32 with exact zeros (inert through
    # ReLU and the following dots); weights in bf16, biases in f32.  w3/b3 are
    # stored transposed for the lane-dense output tile.
    w1p = _pad_to(w1, (in_dim, h1p)).astype(cd)
    b1p = _pad_to(b1, (1, h1p)).astype(jnp.float32)
    w2p = _pad_to(w2, (h1p, h2p)).astype(cd)
    b2p = _pad_to(b2, (1, h2p)).astype(jnp.float32)
    w3p = _pad_to(w3.T, (out_dim, h2p)).astype(cd)        # (out_dim, h2p)
    b3p = b3.reshape(out_dim, 1).astype(jnp.float32)      # (out_dim, 1)

    # Batch tiling: big tiles amortize per-step overhead; tb is a multiple of
    # 128 in the multi-block case so the (out_dim, tb) output block is lane
    # aligned, and the ragged tail block is handled by the grid (no host pad).
    n_blocks = pl.cdiv(batch, block_batch)
    if n_blocks == 1 and batch >= 2 * _LANE:
        n_blocks = 2                              # keep both v7x TCs busy
    if n_blocks == 1:
        tb = batch                                # block == full array dims
    else:
        tb = _ceil_to(pl.cdiv(batch, n_blocks), _LANE)
        n_blocks = pl.cdiv(batch, tb)
    grid = (n_blocks,)

    flops = 2 * batch * (in_dim * h1p + h1p * h2p + h2p * out_dim)
    bytes_accessed = int(
        x.size * x.dtype.itemsize
        + sum(a.size * a.dtype.itemsize
              for a in (w1p, b1p, w2p, b2p, w3p, b3p))
        + batch * out_dim * 4)

    out_t = pl.pallas_call(
        mlp_kernel,
        out_shape=jax.ShapeDtypeStruct((out_dim, batch), jnp.float32),
        grid=grid,
        in_specs=[
            pl.BlockSpec((tb, in_dim), lambda i: (i, 0)),       # x tile (pipelined)
            pl.BlockSpec((in_dim, h1p), lambda i: (0, 0)),      # resident params
            pl.BlockSpec((1, h1p), lambda i: (0, 0)),
            pl.BlockSpec((h1p, h2p), lambda i: (0, 0)),
            pl.BlockSpec((1, h2p), lambda i: (0, 0)),
            pl.BlockSpec((out_dim, h2p), lambda i: (0, 0)),
            pl.BlockSpec((out_dim, 1), lambda i: (0, 0)),
        ],
        out_specs=pl.BlockSpec((out_dim, tb), lambda i: (0, i)),
        compiler_params=pltpu.CompilerParams(
            dimension_semantics=("parallel",)),
        cost_estimate=pl.CostEstimate(
            flops=flops, transcendentals=0, bytes_accessed=bytes_accessed),
    )(x, w1p, b1p, w2p, b2p, w3p, b3p)

    return out_t.T                                # (batch, out_dim)


def init_params(key, input_dim, hidden_dim, output_dim):
    """PyTorch-style uniform(-1/sqrt(fan_in), 1/sqrt(fan_in)) init."""
    dims = [input_dim] + list(hidden_dim) + [output_dim]
    params = {}
    for i in range(len(dims) - 1):
        fan_in, fan_out = dims[i], dims[i + 1]
        key, kw, kb = jax.random.split(key, 3)
        bound = 1.0 / jnp.sqrt(jnp.float32(fan_in))
        # Stored as (in, out) = transpose of PyTorch's (out, in).
        params[f"w{i + 1}"] = jax.random.uniform(
            kw, (fan_in, fan_out), jnp.float32, -bound, bound)
        params[f"b{i + 1}"] = jax.random.uniform(
            kb, (1, fan_out), jnp.float32, -bound, bound)
    return params


def net_forward_ref(x, params, compute_dtype=jnp.bfloat16):
    """Pure-JAX reference matching the kernel's bf16-matmul / f32-accumulate math."""
    cd = compute_dtype
    h = jnp.dot(x.astype(cd), params["w1"].astype(cd),
                preferred_element_type=jnp.float32)
    h = jnp.maximum(h + params["b1"], 0.0)
    h = jnp.dot(h.astype(cd), params["w2"].astype(cd),
                preferred_element_type=jnp.float32)
    h = jnp.maximum(h + params["b2"], 0.0)
    y = jnp.dot(h.astype(cd), params["w3"].astype(cd),
                preferred_element_type=jnp.float32)
    return y + params["b3"]


if __name__ == "__main__":
    input_dim = 16
    hidden_dim = [30, 30]
    output_dim = 1

    key = jax.random.PRNGKey(0)
    key, kx1, kx2 = jax.random.split(key, 3)
    params = init_params(key, input_dim, hidden_dim, output_dim)

    # Case 1: small batch -> single full-array block (no (8,128) padding games).
    x_small = jax.random.normal(kx1, (50, input_dim), jnp.float32)
    out_small = jax.block_until_ready(net_forward(x_small, params))
    ref_small = net_forward_ref(x_small, params)
    assert out_small.shape == (50, output_dim)
    assert jnp.allclose(out_small, ref_small, atol=1e-2, rtol=1e-2), (
        float(jnp.max(jnp.abs(out_small - ref_small))))

    # Case 2: multi-step "parallel" grid with a ragged tail block and
    # lane-dense (1, tb) output tiles.
    x_big = jax.random.normal(kx2, (300, input_dim), jnp.float32)
    out_big = jax.block_until_ready(net_forward(x_big, params, block_batch=128))
    ref_big = net_forward_ref(x_big, params)
    assert out_big.shape == (300, output_dim)
    assert jnp.allclose(out_big, ref_big, atol=1e-2, rtol=1e-2), (
        float(jnp.max(jnp.abs(out_big - ref_big))))

    print("KERNEL_OK")
</pallas_src>

<mosaic_0001>
module attributes {stable_mosaic.version = 11 : i64} {
  func.func @mlp_kernel(%arg0: i32, %arg1: memref<50x16xf32, #tpu.memory_space<vmem>>, %arg2: memref<16x32xbf16, #tpu.memory_space<vmem>>, %arg3: memref<1x32xf32, #tpu.memory_space<vmem>>, %arg4: memref<32x32xbf16, #tpu.memory_space<vmem>>, %arg5: memref<1x32xf32, #tpu.memory_space<vmem>>, %arg6: memref<1x32xbf16, #tpu.memory_space<vmem>>, %arg7: memref<1x1xf32, #tpu.memory_space<vmem>>, %arg8: memref<1x50xf32, #tpu.memory_space<vmem>>) attributes {dimension_semantics = [#tpu.dimension_semantics<parallel>], iteration_bounds = array<i64: 1>, scalar_prefetch = 0 : i64, scratch_operands = 0 : i64, tpu.core_type = #tpu.core_type<tc>, window_params = [{transform_indices = @transform_0, window_bounds = array<i64: 50, 16>}, {pipeline_mode = #tpu.pipeline_mode<synchronous>, transform_indices = @transform_1, window_bounds = array<i64: 16, 32>}, {pipeline_mode = #tpu.pipeline_mode<synchronous>, transform_indices = @transform_2, window_bounds = array<i64: 1, 32>}, {pipeline_mode = #tpu.pipeline_mode<synchronous>, transform_indices = @transform_3, window_bounds = array<i64: 32, 32>}, {pipeline_mode = #tpu.pipeline_mode<synchronous>, transform_indices = @transform_4, window_bounds = array<i64: 1, 32>}, {pipeline_mode = #tpu.pipeline_mode<synchronous>, transform_indices = @transform_5, window_bounds = array<i64: 1, 32>}, {pipeline_mode = #tpu.pipeline_mode<synchronous>, transform_indices = @transform_6, window_bounds = array<i64: 1, 1>}, {transform_indices = @transform_7, window_bounds = array<i64: 1, 50>}]} {
    %c0 = arith.constant 0 : index
    %c0_0 = arith.constant 0 : index
    %0 = vector.load %arg1[%c0, %c0_0] : memref<50x16xf32, #tpu.memory_space<vmem>>, vector<50x16xf32>
    %1 = arith.truncf %0 : vector<50x16xf32> to vector<50x16xbf16>
    %c0_1 = arith.constant 0 : index
    %c0_2 = arith.constant 0 : index
    %2 = vector.load %arg2[%c0_1, %c0_2] : memref<16x32xbf16, #tpu.memory_space<vmem>>, vector<16x32xbf16>
    %cst = arith.constant dense<0.000000e+00> : vector<50x32xf32>
    %3 = tpu.matmul %1, %2, %cst {dimension_numbers = #tpu.dot_dimension_numbers<[1], [0], [0], [1], [0, 0, 1, 1], [], []>} : vector<50x16xbf16>, vector<16x32xbf16>, vector<50x32xf32> -> vector<50x32xf32>
    %c0_3 = arith.constant 0 : index
    %c0_4 = arith.constant 0 : index
    %4 = vector.load %arg3[%c0_3, %c0_4] : memref<1x32xf32, #tpu.memory_space<vmem>>, vector<1x32xf32>
    %5 = vector.broadcast %4 : vector<1x32xf32> to vector<50x32xf32>
    %6 = arith.addf %3, %5 : vector<50x32xf32>
    %cst_5 = arith.constant 0.000000e+00 : f32
    %7 = vector.broadcast %cst_5 : f32 to vector<50x32xf32>
    %8 = arith.maximumf %6, %7 : vector<50x32xf32>
    %9 = arith.truncf %8 : vector<50x32xf32> to vector<50x32xbf16>
    %c0_6 = arith.constant 0 : index
    %c0_7 = arith.constant 0 : index
    %10 = vector.load %arg4[%c0_6, %c0_7] : memref<32x32xbf16, #tpu.memory_space<vmem>>, vector<32x32xbf16>
    %cst_8 = arith.constant dense<0.000000e+00> : vector<50x32xf32>
    %11 = tpu.matmul %9, %10, %cst_8 {dimension_numbers = #tpu.dot_dimension_numbers<[1], [0], [0], [1], [0, 0, 1, 1], [], []>} : vector<50x32xbf16>, vector<32x32xbf16>, vector<50x32xf32> -> vector<50x32xf32>
    %c0_9 = arith.constant 0 : index
    %c0_10 = arith.constant 0 : index
    %12 = vector.load %arg5[%c0_9, %c0_10] : memref<1x32xf32, #tpu.memory_space<vmem>>, vector<1x32xf32>
    %13 = vector.broadcast %12 : vector<1x32xf32> to vector<50x32xf32>
    %14 = arith.addf %11, %13 : vector<50x32xf32>
    %cst_11 = arith.constant 0.000000e+00 : f32
    %15 = vector.broadcast %cst_11 : f32 to vector<50x32xf32>
    %16 = arith.maximumf %14, %15 : vector<50x32xf32>
    %17 = tpu.transpose %16, [1, 0] : vector<50x32xf32> -> vector<32x50xf32>
    %18 = arith.truncf %17 : vector<32x50xf32> to vector<32x50xbf16>
    %c0_12 = arith.constant 0 : index
    %c0_13 = arith.constant 0 : index
    %19 = vector.load %arg6[%c0_12, %c0_13] : memref<1x32xbf16, #tpu.memory_space<vmem>>, vector<1x32xbf16>
    %cst_14 = arith.constant dense<0.000000e+00> : vector<1x50xf32>
    %20 = tpu.matmul %19, %18, %cst_14 {dimension_numbers = #tpu.dot_dimension_numbers<[1], [0], [0], [1], [0, 0, 1, 1], [], []>} : vector<1x32xbf16>, vector<32x50xbf16>, vector<1x50xf32> -> vector<1x50xf32>
    %c0_15 = arith.constant 0 : index
    %c0_16 = arith.constant 0 : index
    %21 = vector.load %arg7[%c0_15, %c0_16] : memref<1x1xf32, #tpu.memory_space<vmem>>, vector<1x1xf32>
    %22 = vector.broadcast %21 : vector<1x1xf32> to vector<1x50xf32>
    %23 = arith.addf %20, %22 : vector<1x50xf32>
    %c0_17 = arith.constant 0 : index
    %c0_18 = arith.constant 0 : index
    %24 = vector.load %arg8[%c0_17, %c0_18] : memref<1x50xf32, #tpu.memory_space<vmem>>, vector<1x50xf32>
    tpu.vector_store %arg8[%c0_17, %c0_18], %23 {strides = array<i32>} : memref<1x50xf32, #tpu.memory_space<vmem>>, vector<1x50xf32>,
    return
  }
  func.func @transform_0(%arg0: i32) -> (i32, i32) {
    %c0_i32 = arith.constant 0 : i32
    %c0_i32_0 = arith.constant 0 : i32
    return %arg0, %c0_i32 : i32, i32
  }
  func.func @transform_1(%arg0: i32) -> (i32, i32) {
    %c0_i32 = arith.constant 0 : i32
    %c0_i32_0 = arith.constant 0 : i32
    %c0_i32_1 = arith.constant 0 : i32
    return %c0_i32, %c0_i32_0 : i32, i32
  }
  func.func @transform_2(%arg0: i32) -> (i32, i32) {
    %c0_i32 = arith.constant 0 : i32
    %c0_i32_0 = arith.constant 0 : i32
    %c0_i32_1 = arith.constant 0 : i32
    return %c0_i32, %c0_i32_0 : i32, i32
  }
  func.func @transform_3(%arg0: i32) -> (i32, i32) {
    %c0_i32 = arith.constant 0 : i32
    %c0_i32_0 = arith.constant 0 : i32
    %c0_i32_1 = arith.constant 0 : i32
    return %c0_i32, %c0_i32_0 : i32, i32
  }
  func.func @transform_4(%arg0: i32) -> (i32, i32) {
    %c0_i32 = arith.constant 0 : i32
    %c0_i32_0 = arith.constant 0 : i32
    %c0_i32_1 = arith.constant 0 : i32
    return %c0_i32, %c0_i32_0 : i32, i32
  }
  func.func @transform_5(%arg0: i32) -> (i32, i32) {
    %c0_i32 = arith.constant 0 : i32
    %c0_i32_0 = arith.constant 0 : i32
    %c0_i32_1 = arith.constant 0 : i32
    return %c0_i32, %c0_i32_0 : i32, i32
  }
  func.func @transform_6(%arg0: i32) -> (i32, i32) {
    %c0_i32 = arith.constant 0 : i32
    %c0_i32_0 = arith.constant 0 : i32
    %c0_i32_1 = arith.constant 0 : i32
    return %c0_i32, %c0_i32_0 : i32, i32
  }
  func.func @transform_7(%arg0: i32) -> (i32, i32) {
    %c0_i32 = arith.constant 0 : i32
    %c0_i32_0 = arith.constant 0 : i32
    return %c0_i32, %arg0 : i32, i32
  }
}

</mosaic_0001>

<bundles_post_ra>
// kernel: tpu_custom_call.1
= control target key start
LH: loop header
LB: loop body
LE: loop exit
PB: predicated region body
PF: predicated region fallthrough
CT: control target
= control target key end

     0   :  { %s401_s0 = inlined_call_operand.vmem [shape: f32[50,16], index: 0, kind: input, shape index: {}]   ;;  %s402_s1 = inlined_call_operand.vmem [shape: bf16[16,32], index: 1, kind: input, shape index: {}]   ;;  %s403_s2 = inlined_call_operand.vmem [shape: f32[1,32], index: 2, kind: input, shape index: {}]   ;;  %s404_s3 = inlined_call_operand.vmem [shape: bf16[32,32], index: 3, kind: input, shape index: {}]   ;;  %s405_s4 = inlined_call_operand.vmem [shape: f32[1,32], index: 4, kind: input, shape index: {}]   ;;  %s406_s5 = inlined_call_operand.vmem [shape: bf16[1,32], index: 5, kind: input, shape index: {}]   ;;  %s407_s6 = inlined_call_operand.<no memory space> [shape: f32[1,1], index: 6, kind: input, shape index: {}]   ;;  %s408_s7 = inlined_call_operand.hbm [shape: f32[1,50], index: 7, kind: output, shape index: {}]  }
   0x1   :  { %v12_v0 = vstv %s407_s6 }
   0x2   :  { %13 = vst [vmem:[#allocation2] sm:$0x1] %v12_v0 }
   0x3   :  { %v270_v1 = vld [vmem:[%s402_s1] sm:$0xff]  ;;  %v31_v3 = vld [vmem:[%s401_s0 + $0x8] sm:$0xff]  ;;  %vm53_vm0 = vcmask 130048  }
   0x4   :  { %v30_v2 = vld [vmem:[%s401_s0] sm:$0xff]  ;;  %73 = vmatpush.bf16.msra.mxu0 %v270_v1  ;;  %273 = vmatpush.bf16.msra.mxu1 %v270_v1 }
   0x5   :  { %v37_v4 = vpack.c.bf16 %v31_v3, %v30_v2 }
   0x6   :  { %14 = vsyncpa [#allocation4], 0  ;;  %v36_v5 = vld [vmem:[%s401_s0 + $0x30] sm:$0x3]  ;;  %v33_v8 = vld [vmem:[%s401_s0 + $0x18] sm:$0xff]  ;;  %vm125_vm1 = vcmask 261120  }
   0x7   :  { %253 = vmatmul.msk.bf16.vlgmr.msra.gmra.mxu0 %vm53_vm0, %v37_v4  ;;  %v40_v6 = vpack.c.bf16 %v36_v5, %v36_v5  ;;  %v32_v7 = vld [vmem:[%s401_s0 + $0x10] sm:$0xff]  ;;  %v34_v10 = vld [vmem:[%s401_s0 + $0x20] sm:$0xff]  ;;  %v35_v11 = vld [vmem:[%s401_s0 + $0x28] sm:$0xff]  ;;  %v309_v3 = vmov 0   ;;  %s310_s23 = smov [#allocation3]   ;;  %s240_s27 = sshll.u32 %s408_s7, 4  ;;  %s241_s27 = int_to_ptr.hbm [resolvable:$true] %s240_s27 }
   0x8   :  { %v38_v9 = vpack.c.bf16 %v33_v8, %v32_v7  ;;  %v39_v12 = vpack.c.bf16 %v35_v11, %v34_v10  ;;  %v272_v13 = vld [vmem:[%s404_s3 + $0x8] sm:$0xff]  ;;  %v271_v14 = vld [vmem:[%s404_s3] sm:$0xff]  ;;  %279 = vset.pattern.permute.xlu1 %v309_v3  ;;  %s238_s24 = sshll.u32 %s310_s23, 4  ;;  %vm231_vm2 = vcmask 401408   ;;  %s239_s24 = int_to_ptr.vmem [resolvable:$true] %s238_s24 }
   0x9   :  { %256 = vmatmul.msk.bf16.vlgmr.msra.gmra.mxu1 %vm53_vm0, %v40_v6  ;;  %274 = vmatpush.bf16.msra.mxu3 %v272_v13  ;;  %v281_v16 = vld [vmem:[%s403_s2] ss:$0 sm:$0xff] }
   0xa   :  { %144 = vmatpush.bf16.msrb.mxu1 %v272_v13  ;;  %v282_v42 = vld [vmem:[%s405_s4] ss:$0 sm:$0xff] }
   0xb   :  { %v208_v2 = vld [vmem:[#allocation2] sm:$0x1] }
   0xc   :  { %211 = vperm.xlu1 %279, %v208_v2  }
   0xd   :  { %275 = vmatpush.bf16.msra.mxu3 %v271_v14 }
   0xe   :  { %145 = vmatpush.bf16.msrb.mxu1 %v271_v14 }
  0x17   :  { %254 = vmatmul.msk.bf16.gmra.mxu0 %vm53_vm0, %v38_v9  ;;  %v207_v9 = vld [vmem:[%s406_s5] sm:$0x1] }
  0x27   :  { %255 = vmatmul.msk.bf16.gmra.mxu0 %vm53_vm0, %v39_v12 }
  0x7e   :  { %v212_v10 = vpop.permute.xlu1 %211 }
  0x7f   :  { %v214_v11 = vperm.slane %v212_v10, 0 }
  0x84   :  { %v75_v15 = vpop.f32.mrf.mxu0 }
  0x85   :  { %v76_v17 = vadd.f32 %v281_v16, %v75_v15 }
  0x86   :  { %v90_v23 = vpop.f32.mrf.mxu1 }
  0x87   :  { %v94_v20 = vmax.f32 %v76_v17, 0.0  ;;  %v91_v39 = vadd.f32 %v281_v16, %v90_v23 }
  0x89   :  { %v100_v40 = vmax.f32 %v91_v39, 0.0 }
  0x8b   :  { %v104_v41 = vpack.c.bf16 %v100_v40, %v100_v40 }
  0x8c   :  { %v77_v18 = vpop.f32.mrf.mxu0 }
  0x8d   :  { %v78_v19 = vadd.f32 %v281_v16, %v77_v18 }
  0x8e   :  { %v92_v26 = vpop.f32.mrf.mxu1 }
  0x8f   :  { %v95_v21 = vmax.f32 %v78_v19, 0.0 }
  0x91   :  { %v101_v22 = vpack.c.bf16 %v95_v21, %v94_v20 }
  0x93   :  { %265 = vmatmul.msk.bf16.vlgmr.msrb.gmra.mxu1 %vm125_vm1, %v101_v22 }
  0x94   :  { %v80_v24 = vpop.f32.mrf.mxu0 }
  0x95   :  { %v81_v25 = vadd.f32 %v281_v16, %v80_v24 }
  0x97   :  { %v96_v29 = vmax.f32 %v81_v25, 0.0 }
  0x9c   :  { %v82_v27 = vpop.f32.mrf.mxu0 }
  0x9d   :  { %v83_v28 = vadd.f32 %v281_v16, %v82_v27 }
  0x9f   :  { %v97_v30 = vmax.f32 %v83_v28, 0.0 }
  0xa1   :  { %v102_v31 = vpack.c.bf16 %v97_v30, %v96_v29 }
  0xa3   :  { %266 = vmatmul.msk.bf16.vlgmr.msra.gmra.mxu3 %vm125_vm1, %v102_v31 }
  0xa4   :  { %v85_v32 = vpop.f32.mrf.mxu0 }
  0xa5   :  { %v86_v33 = vadd.f32 %v281_v16, %v85_v32 }
  0xa7   :  { %v98_v36 = vmax.f32 %v86_v33, 0.0 }
  0xac   :  { %v87_v34 = vpop.f32.mrf.mxu0 }
  0xad   :  { %v88_v35 = vadd.f32 %v281_v16, %v87_v34 }
  0xaf   :  { %v99_v37 = vmax.f32 %v88_v35, 0.0 }
  0xb1   :  { %v103_v38 = vpack.c.bf16 %v99_v37, %v98_v36 }
  0xb3   :  { %267 = vmatmul.msk.bf16.gmra.mxu3 %vm125_vm1, %v103_v38 }
  0xc3   :  { %268 = vmatmul.msk.bf16.gmra.mxu3 %vm125_vm1, %v104_v41 }
 0x110   :  { %v147_v43 = vpop.f32.mrf.mxu1 }
 0x111   :  { %v148_v44 = vadd.f32 %v282_v42, %v147_v43 }
 0x113   :  { %v166_v45 = vmax.f32 %v148_v44, 0.0 }
 0x115   :  { %173 = vxpose.xlu0.b32.start [1/7] (short) (narrow) %v166_v45, 32 }
 0x118   :  { %v149_v46 = vpop.f32.mrf.mxu1 }
 0x119   :  { %v150_v47 = vadd.f32 %v282_v42, %v149_v46 }
 0x11b   :  { %v167_v48 = vmax.f32 %v150_v47, 0.0 }
 0x11d   :  { %174 = vxpose.xlu0.b32.cont [2/7] (short) (narrow) %v167_v48, 32 }
 0x126   :  { %v152_v49 = vpop.f32.mrf.mxu3 }
 0x127   :  { %v153_v50 = vadd.f32 %v282_v42, %v152_v49 }
 0x129   :  { %v168_v51 = vmax.f32 %v153_v50, 0.0 }
 0x12b   :  { %175 = vxpose.xlu0.b32.cont [3/7] (short) (narrow) %v168_v51, 32 }
 0x12e   :  { %v154_v52 = vpop.f32.mrf.mxu3 }
 0x12f   :  { %v155_v53 = vadd.f32 %v282_v42, %v154_v52 }
 0x131   :  { %v169_v54 = vmax.f32 %v155_v53, 0.0 }
 0x133   :  { %176 = vxpose.xlu0.b32.cont [4/7] (short) (narrow) %v169_v54, 32 }
 0x136   :  { %v157_v55 = vpop.f32.mrf.mxu3 }
 0x137   :  { %v158_v56 = vadd.f32 %v282_v42, %v157_v55 }
 0x139   :  { %v170_v57 = vmax.f32 %v158_v56, 0.0 }
 0x13b   :  { %177 = vxpose.xlu0.b32.cont [5/7] (short) (narrow) %v170_v57, 32 }
 0x13e   :  { %v159_v58 = vpop.f32.mrf.mxu3 }
 0x13f   :  { %v160_v59 = vadd.f32 %v282_v42, %v159_v58 }
 0x141   :  { %v171_v60 = vmax.f32 %v160_v59, 0.0 }
 0x143   :  { %178 = vxpose.xlu0.b32.cont [6/7] (short) (narrow) %v171_v60, 32 }
 0x146   :  { %v162_v61 = vpop.f32.mrf.mxu3 }
 0x147   :  { %v163_v62 = vadd.f32 %v282_v42, %v162_v61 }
 0x149   :  { %v172_v63 = vmax.f32 %v163_v62, 0.0 }
 0x14b   :  { %179 = vxpose.xlu0.b32.end [7/7] (short) (narrow) %v172_v63, 32 }
 0x14e   :  { %v164_v0 = vpop.f32.mrf.mxu3 }
 0x1b2   :  { %280 = vset.pattern.permute.xlu0 %v309_v3 }
 0x1bf   :  { %v189_v1 = vpop.trf.xlu0 }
 0x1c7   :  { %v190_v4 = vpop.trf.xlu0 }
 0x1c8   :  { %v205_v8 = vpack.c.bf16 %v190_v4, %v189_v1 }
 0x1cf   :  { %v191_v5 = vpop.trf.xlu0 }
 0x1d7   :  { %v192_v6 = vpop.trf.xlu0 }
 0x1d8   :  { %v206_v7 = vpack.c.bf16 %v192_v6, %v191_v5 }
 0x1da   :  { %224 = vmatpush.bf16.msra.mxu2 %v206_v7 }
 0x1de   :  { %225 = vmatpush.bf16.msra.mxu2 %v205_v8 }
 0x1e1   :  { %269 = vmatmul.msk.bf16.vlgmr.msra.gmra.mxu2 %vm125_vm1, %v207_v9 }
 0x264   :  { %v227_v12 = vpop.f32.mrf.mxu2 }
 0x265   :  { %v228_v13 = vadd.f32 %v227_v12, %v214_v11 }
 0x267   :  { %232 = vst.msk [vmem:[#allocation3] sm:$0x1] %vm231_vm2, %v228_v13 }
 0x268   :  { %243 = dma.vmem_to_hbm [thread:$0]  %s239_s24, 16, %s241_s27, [#allocation4]  }
 0x26c   :  { %v229_v14 = vpop.f32.mrf.mxu2 }
 0x26d   :  { %307 = dma.done.wait [#allocation4], 16  }
 0x26e   :  { %308 = vsyncadd [#allocation4], 4294967280 }
 0x26f   :  { %248 = vsyncpa [#allocation4], 1 }

</bundles_post_ra>
